<compile_context>
chip_gen: v7x
topology: tpu7x:2x2x1
jax: 0.10.0
libtpu: 0.0.40
codegen_flags: <defaults>
</compile_context>

<pallas_src>
import jax
import jax.numpy as jnp
from jax.experimental import pallas as pl
from jax.experimental.pallas import tpu as pltpu


def _round_up(a, b):
    return (a + b - 1) // b * b


def _phase1_vmem_limit():
    """~100 MiB on 128 MiB parts (v5e/v6e), ~48 MiB on 64 MiB-per-core parts (v7x)."""
    try:
        cap = int(pltpu.get_tpu_info().vmem_capacity_bytes)
    except Exception:
        cap = 64 * 1024 * 1024
    return max(32 * 1024 * 1024, min(100 * 1024 * 1024, cap - 16 * 1024 * 1024))


def bottleneck_forward(x_nchw, w_oihw, bias, gamma, beta, eps=1e-5,
                       tile_m=1024, compute_dtype=jnp.bfloat16):
    """Equivalent of BottleNeck(in_c, out_c).forward(x) for a freshly-constructed
    (training-mode) module.  `bias` is accepted for signature parity but unused: the
    training-mode BatchNorm mean subtraction cancels the conv bias exactly.
    compute_dtype selects the MXU operand / conv-intermediate dtype (bf16 fast path by
    default; pass jnp.float32 for strict f32 conv semantics)."""
    del bias  # cancels exactly under batch-stats BatchNorm

    N, Cin, H, W = x_nchw.shape
    Cout = w_oihw.shape[0]
    Hp, Wp = H + 2, W + 2
    M = N * H * W          # number of valid output pixels (BN statistics denominator)
    Mp = N * Hp * Wp       # padded flat index space the kernels compute over

    # Channel padding: keeps sublanes / MXU rows / stores unmasked. Zero channels are inert.
    cmult = 8 if compute_dtype == jnp.float32 else 16
    Cinp = _round_up(Cin, cmult)
    Coutp = _round_up(Cout, cmult)

    # ---- tile selection (lane-dense, halo block must tile the M axis) -------------------
    halo = 2 * Wp + 2                       # largest tap offset (dy=2, dx=2)
    halo_tile = _round_up(halo, 128)        # right-halo block width
    tm = max(128, (int(tile_m) // 128) * 128)
    tm = min(tm, _round_up(Mp, 128))        # never (much) bigger than the problem
    tm = _round_up(tm, halo_tile)           # halo blocks must land exactly at tile ends
    m_pad = _round_up(Mp, tm)
    num_tiles = m_pad // tm
    ratio = tm // halo_tile                 # halo-block index stride per tile
    total_cols = m_pad + halo_tile          # activation gets one extra halo block of zeros

    # ---- wrapper layout plumbing (no im2col; one padded channel-major activation) -------
    xc = jnp.transpose(x_nchw, (1, 0, 2, 3)).astype(compute_dtype)     # (Cin, N, H, W)
    xc = jnp.pad(xc, ((0, Cinp - Cin), (0, 0), (1, 1), (1, 1)))        # (Cinp, N, Hp, Wp)
    xflat = xc.reshape(Cinp, Mp)
    xflat = jnp.pad(xflat, ((0, 0), (0, total_cols - Mp)))             # zero tail + halo

    # PyTorch OIHW -> (tap, Cout, Cin) with tap = dy*3 + dx.
    w9 = jnp.transpose(w_oihw, (2, 3, 0, 1)).reshape(9, Cout, Cin)
    w9 = jnp.pad(w9, ((0, 0), (0, Coutp - Cout), (0, Cinp - Cin))).astype(compute_dtype)

    tap_off = tuple(dy * Wp + dx for dy in range(3) for dx in range(3))

    # Validity mask over the padded flat space (1 = real output pixel).  Precomputed in the
    # wrapper (tiny, 4*M bytes) so the kernel needs no vector integer div/mod.
    pos = jnp.arange(Mp, dtype=jnp.int32)
    valid = (((pos % Wp) < W) & (((pos // Wp) % Hp) < H)).astype(jnp.float32).reshape(1, Mp)
    valid = jnp.pad(valid, ((0, 0), (0, m_pad - Mp)))                  # padded tail invalid

    # ---------------------------------------------------------------------------------
    # Phase 1: 9-tap conv (MXU, f32 accumulation) + per-tile partial batch statistics.
    # ---------------------------------------------------------------------------------
    def conv_stats_kernel(w_ref, x0_ref, xh_ref, mask_ref, conv_ref, sum_ref, ssq_ref, xw_ref):
        # Stage the current tile + right halo contiguously so every tap is a static slice.
        xw_ref[:, :tm] = x0_ref[...]
        xw_ref[:, tm:] = xh_ref[...]
        acc = jnp.zeros((Coutp, tm), jnp.float32)
        for k in range(9):                                   # unrolled: static tap offsets
            acc = acc + jnp.dot(w_ref[k], xw_ref[:, tap_off[k]:tap_off[k] + tm],
                                preferred_element_type=jnp.float32)
        # Zero the (garbage) padded-border columns so batch statistics see only valid pixels.
        conv = acc * mask_ref[...]
        conv_ref[...] = conv.astype(conv_ref.dtype)
        sum_ref[...] = jnp.sum(conv, axis=-1, keepdims=True).reshape(1, Coutp, 1)
        ssq_ref[...] = jnp.sum(conv * conv, axis=-1, keepdims=True).reshape(1, Coutp, 1)

    cparams_p1 = pltpu.CompilerParams(dimension_semantics=("parallel",),
                                      vmem_limit_bytes=_phase1_vmem_limit())

    def run_phase1(weight_spec):
        return pl.pallas_call(
            conv_stats_kernel,
            out_shape=(
                jax.ShapeDtypeStruct((Coutp, m_pad), compute_dtype),       # conv intermediate
                jax.ShapeDtypeStruct((num_tiles, Coutp, 1), jnp.float32),  # per-tile sums
                jax.ShapeDtypeStruct((num_tiles, Coutp, 1), jnp.float32),  # per-tile sum sq
            ),
            grid_spec=pltpu.PrefetchScalarGridSpec(
                num_scalar_prefetch=0,
                grid=(num_tiles,),
                in_specs=[
                    weight_spec,                                           # resident weights
                    pl.BlockSpec((Cinp, tm), lambda i: (0, i)),            # current tile
                    pl.BlockSpec((Cinp, halo_tile), lambda i: (0, (i + 1) * ratio)),  # halo
                    pl.BlockSpec((1, tm), lambda i: (0, i)),               # validity mask
                ],
                out_specs=[
                    pl.BlockSpec((Coutp, tm), lambda i: (0, i)),
                    pl.BlockSpec((1, Coutp, 1), lambda i: (i, 0, 0)),
                    pl.BlockSpec((1, Coutp, 1), lambda i: (i, 0, 0)),
                ],
                scratch_shapes=[pltpu.VMEM((Cinp, tm + halo_tile), compute_dtype)],
            ),
            compiler_params=cparams_p1,
        )(w9, xflat, xflat, valid)

    try:
        # Weight block never changes across the grid -> single-buffer it (saves one full
        # 9*Coutp*Cinp VMEM copy; matters most under v7x's 64 MiB VMEM).
        conv_out, tile_sum, tile_ssq = run_phase1(
            pl.BlockSpec((9, Coutp, Cinp), lambda i: (0, 0, 0),
                         pipeline_mode=pl.Buffered(1)))
    except Exception:
        # Fallback if this Pallas build rejects buffer_count=1.
        conv_out, tile_sum, tile_ssq = run_phase1(
            pl.BlockSpec((9, Coutp, Cinp), lambda i: (0, 0, 0)))

    # ---- per-channel BN folding, done once on tiny (Coutp, 1) f32 vectors ---------------
    # Per-tile partials reduced here in f32 (better conditioned than a single running
    # accumulator; a Welford-style combine would be the full fix for extreme M).
    ch_sum = jnp.sum(tile_sum, axis=0)                       # (Coutp, 1)
    ch_ssq = jnp.sum(tile_ssq, axis=0)
    mean = ch_sum / M
    var = jnp.maximum(ch_ssq / M - mean * mean, 0.0)         # biased, training-mode BN
    inv = jax.lax.rsqrt(var + eps)
    gamma_p = jnp.pad(gamma.astype(jnp.float32), (0, Coutp - Cout)).reshape(Coutp, 1)
    beta_p = jnp.pad(beta.astype(jnp.float32), (0, Coutp - Cout)).reshape(Coutp, 1)
    scale = gamma_p * inv
    shift = beta_p - mean * scale

    # ---------------------------------------------------------------------------------
    # Phase 2: y = max(conv * scale + shift, 0), f32 epilogue math (v5e-safe), f32 output.
    # ---------------------------------------------------------------------------------
    def bn_relu_kernel(scale_ref, shift_ref, conv_ref, out_ref):
        c = conv_ref[...].astype(jnp.float32)
        out_ref[...] = jnp.maximum(c * scale_ref[...] + shift_ref[...], 0.0)

    cparams_p2 = pltpu.CompilerParams(dimension_semantics=("parallel",),
                                      vmem_limit_bytes=32 * 1024 * 1024)
    out2d = pl.pallas_call(
        bn_relu_kernel,
        out_shape=jax.ShapeDtypeStruct((Coutp, m_pad), jnp.float32),
        grid_spec=pltpu.PrefetchScalarGridSpec(
            num_scalar_prefetch=0,
            grid=(num_tiles,),
            in_specs=[
                pl.BlockSpec((Coutp, 1), lambda i: (0, 0)),
                pl.BlockSpec((Coutp, 1), lambda i: (0, 0)),
                pl.BlockSpec((Coutp, tm), lambda i: (0, i)),
            ],
            out_specs=pl.BlockSpec((Coutp, tm), lambda i: (0, i)),
        ),
        compiler_params=cparams_p2,
    )(scale, shift, conv_out)

    # Extract the valid pixels from the padded flat space and permute leading axes to NCHW
    # (contiguous HW blocks move; no lane transpose).
    out = out2d[:Cout, :Mp].reshape(Cout, N, Hp, Wp)[:, :, :H, :W]
    return jnp.transpose(out, (1, 0, 2, 3))


def _reference_forward(x_nchw, w_oihw, bias, gamma, beta, eps=1e-5):
    """Pure-JAX reference (conv + training-mode BN + ReLU) for sanity checking."""
    conv = jax.lax.conv_general_dilated(
        x_nchw, w_oihw, window_strides=(1, 1), padding=((1, 1), (1, 1)),
        dimension_numbers=("NCHW", "OIHW", "NCHW"),
        precision=jax.lax.Precision.HIGHEST,
    ) + bias.reshape(1, -1, 1, 1)
    mean = jnp.mean(conv, axis=(0, 2, 3), keepdims=True)
    var = jnp.mean((conv - mean) ** 2, axis=(0, 2, 3), keepdims=True)
    y = (conv - mean) * jax.lax.rsqrt(var + eps)
    y = y * gamma.reshape(1, -1, 1, 1) + beta.reshape(1, -1, 1, 1)
    return jnp.maximum(y, 0.0)


if __name__ == "__main__":
    key = jax.random.PRNGKey(0)

    # Case 1: N=2, Cin=4, H=W=16, Cout=8.
    N, Cin, H, W, Cout = 2, 4, 16, 16, 8
    kx, kw, kb = jax.random.split(key, 3)
    x = jax.random.normal(kx, (N, Cin, H, W), dtype=jnp.float32)
    w = 0.1 * jax.random.normal(kw, (Cout, Cin, 3, 3), dtype=jnp.float32)
    b = 0.1 * jax.random.normal(kb, (Cout,), dtype=jnp.float32)
    gamma = jnp.ones((Cout,), dtype=jnp.float32)
    beta = jnp.zeros((Cout,), dtype=jnp.float32)
    ref = jax.block_until_ready(_reference_forward(x, w, b, gamma, beta))

    # (a) strict-parity path: f32 operands; a small tile forces a multi-tile grid which
    #     exercises the halo blocks, per-tile partial-stats reduction and pipelining.
    out_f32 = jax.block_until_ready(
        bottleneck_forward(x, w, b, gamma, beta, tile_m=256, compute_dtype=jnp.float32))
    assert out_f32.shape == (N, Cout, H, W)
    assert jnp.allclose(out_f32, ref, atol=1e-3, rtol=1e-3), \
        float(jnp.max(jnp.abs(out_f32 - ref)))

    # (b) default fast path: bf16 MXU operands + bf16 conv intermediate (f32 accumulation).
    #     Compare against the reference evaluated on bf16-rounded inputs so that only the
    #     bf16 intermediate rounding (<~1e-2 after normalization) remains as a difference.
    out_bf16 = jax.block_until_ready(bottleneck_forward(x, w, b, gamma, beta))
    ref_bf = _reference_forward(x.astype(jnp.bfloat16).astype(jnp.float32),
                                w.astype(jnp.bfloat16).astype(jnp.float32),
                                b, gamma, beta)
    assert out_bf16.shape == (N, Cout, H, W)
    assert jnp.allclose(out_bf16, ref_bf, atol=2e-2, rtol=2e-2), \
        float(jnp.max(jnp.abs(out_bf16 - ref_bf)))

    # Case 2: odd shapes (Mp not a multiple of 128, odd channel counts -> padding paths),
    # non-trivial affine parameters.
    N2, Cin2, H2, W2, Cout2 = 1, 3, 15, 15, 5
    k1, k2, k3, k4, k5 = jax.random.split(jax.random.PRNGKey(1), 5)
    x2 = jax.random.normal(k1, (N2, Cin2, H2, W2), dtype=jnp.float32)
    w2 = 0.1 * jax.random.normal(k2, (Cout2, Cin2, 3, 3), dtype=jnp.float32)
    b2 = 0.1 * jax.random.normal(k3, (Cout2,), dtype=jnp.float32)
    g2 = 1.0 + 0.1 * jax.random.normal(k4, (Cout2,), dtype=jnp.float32)
    be2 = 0.1 * jax.random.normal(k5, (Cout2,), dtype=jnp.float32)
    ref2 = jax.block_until_ready(_reference_forward(x2, w2, b2, g2, be2))

    out2_f32 = jax.block_until_ready(
        bottleneck_forward(x2, w2, b2, g2, be2, compute_dtype=jnp.float32))
    assert out2_f32.shape == (N2, Cout2, H2, W2)
    assert jnp.allclose(out2_f32, ref2, atol=1e-3, rtol=1e-3), \
        float(jnp.max(jnp.abs(out2_f32 - ref2)))

    out2_bf16 = jax.block_until_ready(bottleneck_forward(x2, w2, b2, g2, be2))
    ref2_bf = _reference_forward(x2.astype(jnp.bfloat16).astype(jnp.float32),
                                 w2.astype(jnp.bfloat16).astype(jnp.float32),
                                 b2, g2, be2)
    assert jnp.allclose(out2_bf16, ref2_bf, atol=2e-2, rtol=2e-2), \
        float(jnp.max(jnp.abs(out2_bf16 - ref2_bf)))

    print("KERNEL_OK")
</pallas_src>

<mosaic_0001>
module attributes {stable_mosaic.version = 11 : i64} {
  func.func @conv_stats_kernel(%arg0: i32, %arg1: memref<9x8x8xf32, #tpu.memory_space<vmem>>, %arg2: memref<8x256xf32, #tpu.memory_space<vmem>>, %arg3: memref<8x128xf32, #tpu.memory_space<vmem>>, %arg4: memref<1x256xf32, #tpu.memory_space<vmem>>, %arg5: memref<8x256xf32, #tpu.memory_space<vmem>>, %arg6: memref<1x8x1xf32, #tpu.memory_space<vmem>>, %arg7: memref<1x8x1xf32, #tpu.memory_space<vmem>>, %arg8: memref<8x384xf32, #tpu.memory_space<vmem>>) attributes {dimension_semantics = [#tpu.dimension_semantics<parallel>], iteration_bounds = array<i64: 3>, scalar_prefetch = 0 : i64, scratch_operands = 1 : i64, tpu.core_type = #tpu.core_type<tc>, window_params = [{pipeline_mode = #tpu.pipeline_mode<synchronous>, transform_indices = @transform_0, window_bounds = array<i64: 9, 8, 8>}, {transform_indices = @transform_1, window_bounds = array<i64: 8, 256>}, {transform_indices = @transform_2, window_bounds = array<i64: 8, 128>}, {transform_indices = @transform_3, window_bounds = array<i64: 1, 256>}, {transform_indices = @transform_4, window_bounds = array<i64: 8, 256>}, {transform_indices = @transform_5, window_bounds = array<i64: 1, 8, 1>}, {transform_indices = @transform_6, window_bounds = array<i64: 1, 8, 1>}]} {
    %c0 = arith.constant 0 : index
    %c0_0 = arith.constant 0 : index
    %0 = vector.load %arg2[%c0, %c0_0] : memref<8x256xf32, #tpu.memory_space<vmem>>, vector<8x256xf32>
    %c0_1 = arith.constant 0 : index
    %c0_2 = arith.constant 0 : index
    %1 = vector.load %arg8[%c0_1, %c0_2] : memref<8x384xf32, #tpu.memory_space<vmem>>, vector<8x256xf32>
    tpu.vector_store %arg8[%c0_1, %c0_2], %0 {strides = array<i32>} : memref<8x384xf32, #tpu.memory_space<vmem>>, vector<8x256xf32>,
    %c0_3 = arith.constant 0 : index
    %c0_4 = arith.constant 0 : index
    %2 = vector.load %arg3[%c0_3, %c0_4] : memref<8x128xf32, #tpu.memory_space<vmem>>, vector<8x128xf32>
    %c0_5 = arith.constant 0 : index
    %c256 = arith.constant 256 : index
    %3 = vector.load %arg8[%c0_5, %c256] : memref<8x384xf32, #tpu.memory_space<vmem>>, vector<8x128xf32>
    tpu.vector_store %arg8[%c0_5, %c256], %2 {strides = array<i32>} : memref<8x384xf32, #tpu.memory_space<vmem>>, vector<8x128xf32>,
    %cst = arith.constant 0.000000e+00 : f32
    %4 = vector.broadcast %cst : f32 to vector<8x256xf32>
    %c0_6 = arith.constant 0 : index
    %c0_7 = arith.constant 0 : index
    %c0_8 = arith.constant 0 : index
    %5 = vector.load %arg1[%c0_6, %c0_7, %c0_8] : memref<9x8x8xf32, #tpu.memory_space<vmem>>, vector<1x8x8xf32>
    %6 = vector.shape_cast %5 : vector<1x8x8xf32> to vector<8x8xf32>
    %c0_9 = arith.constant 0 : index
    %c0_10 = arith.constant 0 : index
    %7 = vector.load %arg8[%c0_9, %c0_10] : memref<8x384xf32, #tpu.memory_space<vmem>>, vector<8x256xf32>
    %cst_11 = arith.constant dense<0.000000e+00> : vector<8x256xf32>
    %8 = tpu.matmul %6, %7, %cst_11 {dimension_numbers = #tpu.dot_dimension_numbers<[1], [0], [0], [1], [0, 0, 1, 1], [], []>} : vector<8x8xf32>, vector<8x256xf32>, vector<8x256xf32> -> vector<8x256xf32>
    %9 = arith.addf %4, %8 : vector<8x256xf32>
    %c1 = arith.constant 1 : index
    %c0_12 = arith.constant 0 : index
    %c0_13 = arith.constant 0 : index
    %10 = vector.load %arg1[%c1, %c0_12, %c0_13] : memref<9x8x8xf32, #tpu.memory_space<vmem>>, vector<1x8x8xf32>
    %11 = vector.shape_cast %10 : vector<1x8x8xf32> to vector<8x8xf32>
    %c0_14 = arith.constant 0 : index
    %c1_15 = arith.constant 1 : index
    %12 = vector.load %arg8[%c0_14, %c1_15] : memref<8x384xf32, #tpu.memory_space<vmem>>, vector<8x256xf32>
    %cst_16 = arith.constant dense<0.000000e+00> : vector<8x256xf32>
    %13 = tpu.matmul %11, %12, %cst_16 {dimension_numbers = #tpu.dot_dimension_numbers<[1], [0], [0], [1], [0, 0, 1, 1], [], []>} : vector<8x8xf32>, vector<8x256xf32>, vector<8x256xf32> -> vector<8x256xf32>
    %14 = arith.addf %9, %13 : vector<8x256xf32>
    %c2 = arith.constant 2 : index
    %c0_17 = arith.constant 0 : index
    %c0_18 = arith.constant 0 : index
    %15 = vector.load %arg1[%c2, %c0_17, %c0_18] : memref<9x8x8xf32, #tpu.memory_space<vmem>>, vector<1x8x8xf32>
    %16 = vector.shape_cast %15 : vector<1x8x8xf32> to vector<8x8xf32>
    %c0_19 = arith.constant 0 : index
    %c2_20 = arith.constant 2 : index
    %17 = vector.load %arg8[%c0_19, %c2_20] : memref<8x384xf32, #tpu.memory_space<vmem>>, vector<8x256xf32>
    %cst_21 = arith.constant dense<0.000000e+00> : vector<8x256xf32>
    %18 = tpu.matmul %16, %17, %cst_21 {dimension_numbers = #tpu.dot_dimension_numbers<[1], [0], [0], [1], [0, 0, 1, 1], [], []>} : vector<8x8xf32>, vector<8x256xf32>, vector<8x256xf32> -> vector<8x256xf32>
    %19 = arith.addf %14, %18 : vector<8x256xf32>
    %c3 = arith.constant 3 : index
    %c0_22 = arith.constant 0 : index
    %c0_23 = arith.constant 0 : index
    %20 = vector.load %arg1[%c3, %c0_22, %c0_23] : memref<9x8x8xf32, #tpu.memory_space<vmem>>, vector<1x8x8xf32>
    %21 = vector.shape_cast %20 : vector<1x8x8xf32> to vector<8x8xf32>
    %c0_24 = arith.constant 0 : index
    %c18 = arith.constant 18 : index
    %22 = vector.load %arg8[%c0_24, %c18] : memref<8x384xf32, #tpu.memory_space<vmem>>, vector<8x256xf32>
    %cst_25 = arith.constant dense<0.000000e+00> : vector<8x256xf32>
    %23 = tpu.matmul %21, %22, %cst_25 {dimension_numbers = #tpu.dot_dimension_numbers<[1], [0], [0], [1], [0, 0, 1, 1], [], []>} : vector<8x8xf32>, vector<8x256xf32>, vector<8x256xf32> -> vector<8x256xf32>
    %24 = arith.addf %19, %23 : vector<8x256xf32>
    %c4 = arith.constant 4 : index
    %c0_26 = arith.constant 0 : index
    %c0_27 = arith.constant 0 : index
    %25 = vector.load %arg1[%c4, %c0_26, %c0_27] : memref<9x8x8xf32, #tpu.memory_space<vmem>>, vector<1x8x8xf32>
    %26 = vector.shape_cast %25 : vector<1x8x8xf32> to vector<8x8xf32>
    %c0_28 = arith.constant 0 : index
    %c19 = arith.constant 19 : index
    %27 = vector.load %arg8[%c0_28, %c19] : memref<8x384xf32, #tpu.memory_space<vmem>>, vector<8x256xf32>
    %cst_29 = arith.constant dense<0.000000e+00> : vector<8x256xf32>
    %28 = tpu.matmul %26, %27, %cst_29 {dimension_numbers = #tpu.dot_dimension_numbers<[1], [0], [0], [1], [0, 0, 1, 1], [], []>} : vector<8x8xf32>, vector<8x256xf32>, vector<8x256xf32> -> vector<8x256xf32>
    %29 = arith.addf %24, %28 : vector<8x256xf32>
    %c5 = arith.constant 5 : index
    %c0_30 = arith.constant 0 : index
    %c0_31 = arith.constant 0 : index
    %30 = vector.load %arg1[%c5, %c0_30, %c0_31] : memref<9x8x8xf32, #tpu.memory_space<vmem>>, vector<1x8x8xf32>
    %31 = vector.shape_cast %30 : vector<1x8x8xf32> to vector<8x8xf32>
    %c0_32 = arith.constant 0 : index
    %c20 = arith.constant 20 : index
    %32 = vector.load %arg8[%c0_32, %c20] : memref<8x384xf32, #tpu.memory_space<vmem>>, vector<8x256xf32>
    %cst_33 = arith.constant dense<0.000000e+00> : vector<8x256xf32>
    %33 = tpu.matmul %31, %32, %cst_33 {dimension_numbers = #tpu.dot_dimension_numbers<[1], [0], [0], [1], [0, 0, 1, 1], [], []>} : vector<8x8xf32>, vector<8x256xf32>, vector<8x256xf32> -> vector<8x256xf32>
    %34 = arith.addf %29, %33 : vector<8x256xf32>
    %c6 = arith.constant 6 : index
    %c0_34 = arith.constant 0 : index
    %c0_35 = arith.constant 0 : index
    %35 = vector.load %arg1[%c6, %c0_34, %c0_35] : memref<9x8x8xf32, #tpu.memory_space<vmem>>, vector<1x8x8xf32>
    %36 = vector.shape_cast %35 : vector<1x8x8xf32> to vector<8x8xf32>
    %c0_36 = arith.constant 0 : index
    %c36 = arith.constant 36 : index
    %37 = vector.load %arg8[%c0_36, %c36] : memref<8x384xf32, #tpu.memory_space<vmem>>, vector<8x256xf32>
    %cst_37 = arith.constant dense<0.000000e+00> : vector<8x256xf32>
    %38 = tpu.matmul %36, %37, %cst_37 {dimension_numbers = #tpu.dot_dimension_numbers<[1], [0], [0], [1], [0, 0, 1, 1], [], []>} : vector<8x8xf32>, vector<8x256xf32>, vector<8x256xf32> -> vector<8x256xf32>
    %39 = arith.addf %34, %38 : vector<8x256xf32>
    %c7 = arith.constant 7 : index
    %c0_38 = arith.constant 0 : index
    %c0_39 = arith.constant 0 : index
    %40 = vector.load %arg1[%c7, %c0_38, %c0_39] : memref<9x8x8xf32, #tpu.memory_space<vmem>>, vector<1x8x8xf32>
    %41 = vector.shape_cast %40 : vector<1x8x8xf32> to vector<8x8xf32>
    %c0_40 = arith.constant 0 : index
    %c37 = arith.constant 37 : index
    %42 = vector.load %arg8[%c0_40, %c37] : memref<8x384xf32, #tpu.memory_space<vmem>>, vector<8x256xf32>
    %cst_41 = arith.constant dense<0.000000e+00> : vector<8x256xf32>
    %43 = tpu.matmul %41, %42, %cst_41 {dimension_numbers = #tpu.dot_dimension_numbers<[1], [0], [0], [1], [0, 0, 1, 1], [], []>} : vector<8x8xf32>, vector<8x256xf32>, vector<8x256xf32> -> vector<8x256xf32>
    %44 = arith.addf %39, %43 : vector<8x256xf32>
    %c8 = arith.constant 8 : index
    %c0_42 = arith.constant 0 : index
    %c0_43 = arith.constant 0 : index
    %45 = vector.load %arg1[%c8, %c0_42, %c0_43] : memref<9x8x8xf32, #tpu.memory_space<vmem>>, vector<1x8x8xf32>
    %46 = vector.shape_cast %45 : vector<1x8x8xf32> to vector<8x8xf32>
    %c0_44 = arith.constant 0 : index
    %c38 = arith.constant 38 : index
    %47 = vector.load %arg8[%c0_44, %c38] : memref<8x384xf32, #tpu.memory_space<vmem>>, vector<8x256xf32>
    %cst_45 = arith.constant dense<0.000000e+00> : vector<8x256xf32>
    %48 = tpu.matmul %46, %47, %cst_45 {dimension_numbers = #tpu.dot_dimension_numbers<[1], [0], [0], [1], [0, 0, 1, 1], [], []>} : vector<8x8xf32>, vector<8x256xf32>, vector<8x256xf32> -> vector<8x256xf32>
    %49 = arith.addf %44, %48 : vector<8x256xf32>
    %c0_46 = arith.constant 0 : index
    %c0_47 = arith.constant 0 : index
    %50 = vector.load %arg4[%c0_46, %c0_47] : memref<1x256xf32, #tpu.memory_space<vmem>>, vector<1x256xf32>
    %51 = vector.broadcast %50 : vector<1x256xf32> to vector<8x256xf32>
    %52 = arith.mulf %49, %51 : vector<8x256xf32>
    %c0_48 = arith.constant 0 : index
    %c0_49 = arith.constant 0 : index
    %53 = vector.load %arg5[%c0_48, %c0_49] : memref<8x256xf32, #tpu.memory_space<vmem>>, vector<8x256xf32>
    tpu.vector_store %arg5[%c0_48, %c0_49], %52 {strides = array<i32>} : memref<8x256xf32, #tpu.memory_space<vmem>>, vector<8x256xf32>,
    %cst_50 = arith.constant dense<0.000000e+00> : vector<8xf32>
    %54 = vector.multi_reduction <add>, %52, %cst_50 [1] : vector<8x256xf32> to vector<8xf32>
    %55 = vector.shape_cast %54 : vector<8xf32> to vector<8x1xf32>
    %56 = vector.shape_cast %55 : vector<8x1xf32> to vector<1x8x1xf32>
    %c0_51 = arith.constant 0 : index
    %c0_52 = arith.constant 0 : index
    %c0_53 = arith.constant 0 : index
    %57 = vector.load %arg6[%c0_51, %c0_52, %c0_53] : memref<1x8x1xf32, #tpu.memory_space<vmem>>, vector<1x8x1xf32>
    tpu.vector_store %arg6[%c0_51, %c0_52, %c0_53], %56 {strides = array<i32>} : memref<1x8x1xf32, #tpu.memory_space<vmem>>, vector<1x8x1xf32>,
    %58 = arith.mulf %52, %52 : vector<8x256xf32>
    %cst_54 = arith.constant dense<0.000000e+00> : vector<8xf32>
    %59 = vector.multi_reduction <add>, %58, %cst_54 [1] : vector<8x256xf32> to vector<8xf32>
    %60 = vector.shape_cast %59 : vector<8xf32> to vector<8x1xf32>
    %61 = vector.shape_cast %60 : vector<8x1xf32> to vector<1x8x1xf32>
    %c0_55 = arith.constant 0 : index
    %c0_56 = arith.constant 0 : index
    %c0_57 = arith.constant 0 : index
    %62 = vector.load %arg7[%c0_55, %c0_56, %c0_57] : memref<1x8x1xf32, #tpu.memory_space<vmem>>, vector<1x8x1xf32>
    tpu.vector_store %arg7[%c0_55, %c0_56, %c0_57], %61 {strides = array<i32>} : memref<1x8x1xf32, #tpu.memory_space<vmem>>, vector<1x8x1xf32>,
    return
  }
  func.func @transform_0(%arg0: i32) -> (i32, i32, i32) {
    %c0_i32 = arith.constant 0 : i32
    %c0_i32_0 = arith.constant 0 : i32
    %c0_i32_1 = arith.constant 0 : i32
    %c0_i32_2 = arith.constant 0 : i32
    return %c0_i32, %c0_i32_0, %c0_i32_1 : i32, i32, i32
  }
  func.func @transform_1(%arg0: i32) -> (i32, i32) {
    %c0_i32 = arith.constant 0 : i32
    %c0_i32_0 = arith.constant 0 : i32
    return %c0_i32, %arg0 : i32, i32
  }
  func.func @transform_2(%arg0: i32) -> (i32, i32) {
    %c1_i32 = arith.constant 1 : i32
    %0 = arith.addi %arg0, %c1_i32 : i32
    %c2_i32 = arith.constant 2 : i32
    %1 = arith.muli %0, %c2_i32 : i32
    %c0_i32 = arith.constant 0 : i32
    %c0_i32_0 = arith.constant 0 : i32
    return %c0_i32, %1 : i32, i32
  }
  func.func @transform_3(%arg0: i32) -> (i32, i32) {
    %c0_i32 = arith.constant 0 : i32
    %c0_i32_0 = arith.constant 0 : i32
    return %c0_i32, %arg0 : i32, i32
  }
  func.func @transform_4(%arg0: i32) -> (i32, i32) {
    %c0_i32 = arith.constant 0 : i32
    %c0_i32_0 = arith.constant 0 : i32
    return %c0_i32, %arg0 : i32, i32
  }
  func.func @transform_5(%arg0: i32) -> (i32, i32, i32) {
    %c0_i32 = arith.constant 0 : i32
    %c0_i32_0 = arith.constant 0 : i32
    %c0_i32_1 = arith.constant 0 : i32
    return %arg0, %c0_i32, %c0_i32_0 : i32, i32, i32
  }
  func.func @transform_6(%arg0: i32) -> (i32, i32, i32) {
    %c0_i32 = arith.constant 0 : i32
    %c0_i32_0 = arith.constant 0 : i32
    %c0_i32_1 = arith.constant 0 : i32
    return %arg0, %c0_i32, %c0_i32_0 : i32, i32, i32
  }
}

module attributes {stable_mosaic.version = 11 : i64} {
  func.func @conv_stats_kernel(%arg0: i32, %arg1: memref<9x8x8xf32, #tpu.memory_space<vmem>>, %arg2: memref<8x256xf32, #tpu.memory_space<vmem>>, %arg3: memref<8x128xf32, #tpu.memory_space<vmem>>, %arg4: memref<1x256xf32, #tpu.memory_space<vmem>>, %arg5: memref<8x256xf32, #tpu.memory_space<vmem>>, %arg6: memref<1x8x1xf32, #tpu.memory_space<vmem>>, %arg7: memref<1x8x1xf32, #tpu.memory_space<vmem>>, %arg8: memref<8x384xf32, #tpu.memory_space<vmem>>) attributes {dimension_semantics = [#tpu.dimension_semantics<parallel>], iteration_bounds = array<i64: 3>, scalar_prefetch = 0 : i64, scratch_operands = 1 : i64, tpu.core_type = #tpu.core_type<tc>, window_params = [{pipeline_mode = #tpu.pipeline_mode<synchronous>, transform_indices = @transform_0, window_bounds = array<i64: 9, 8, 8>}, {transform_indices = @transform_1, window_bounds = array<i64: 8, 256>}, {transform_indices = @transform_2, window_bounds = array<i64: 8, 128>}, {transform_indices = @transform_3, window_bounds = array<i64: 1, 256>}, {transform_indices = @transform_4, window_bounds = array<i64: 8, 256>}, {transform_indices = @transform_5, window_bounds = array<i64: 1, 8, 1>}, {transform_indices = @transform_6, window_bounds = array<i64: 1, 8, 1>}]} {
    %c0 = arith.constant 0 : index
    %c0_0 = arith.constant 0 : index
    %0 = vector.load %arg2[%c0, %c0_0] : memref<8x256xf32, #tpu.memory_space<vmem>>, vector<8x256xf32>
    %c0_1 = arith.constant 0 : index
    %c0_2 = arith.constant 0 : index
    %1 = vector.load %arg8[%c0_1, %c0_2] : memref<8x384xf32, #tpu.memory_space<vmem>>, vector<8x256xf32>
    tpu.vector_store %arg8[%c0_1, %c0_2], %0 {strides = array<i32>} : memref<8x384xf32, #tpu.memory_space<vmem>>, vector<8x256xf32>,
    %c0_3 = arith.constant 0 : index
    %c0_4 = arith.constant 0 : index
    %2 = vector.load %arg3[%c0_3, %c0_4] : memref<8x128xf32, #tpu.memory_space<vmem>>, vector<8x128xf32>
    %c0_5 = arith.constant 0 : index
    %c256 = arith.constant 256 : index
    %3 = vector.load %arg8[%c0_5, %c256] : memref<8x384xf32, #tpu.memory_space<vmem>>, vector<8x128xf32>
    tpu.vector_store %arg8[%c0_5, %c256], %2 {strides = array<i32>} : memref<8x384xf32, #tpu.memory_space<vmem>>, vector<8x128xf32>,
    %cst = arith.constant 0.000000e+00 : f32
    %4 = vector.broadcast %cst : f32 to vector<8x256xf32>
    %c0_6 = arith.constant 0 : index
    %c0_7 = arith.constant 0 : index
    %c0_8 = arith.constant 0 : index
    %5 = vector.load %arg1[%c0_6, %c0_7, %c0_8] : memref<9x8x8xf32, #tpu.memory_space<vmem>>, vector<1x8x8xf32>
    %6 = vector.shape_cast %5 : vector<1x8x8xf32> to vector<8x8xf32>
    %c0_9 = arith.constant 0 : index
    %c0_10 = arith.constant 0 : index
    %7 = vector.load %arg8[%c0_9, %c0_10] : memref<8x384xf32, #tpu.memory_space<vmem>>, vector<8x256xf32>
    %cst_11 = arith.constant dense<0.000000e+00> : vector<8x256xf32>
    %8 = tpu.matmul %6, %7, %cst_11 {dimension_numbers = #tpu.dot_dimension_numbers<[1], [0], [0], [1], [0, 0, 1, 1], [], []>} : vector<8x8xf32>, vector<8x256xf32>, vector<8x256xf32> -> vector<8x256xf32>
    %9 = arith.addf %4, %8 : vector<8x256xf32>
    %c1 = arith.constant 1 : index
    %c0_12 = arith.constant 0 : index
    %c0_13 = arith.constant 0 : index
    %10 = vector.load %arg1[%c1, %c0_12, %c0_13] : memref<9x8x8xf32, #tpu.memory_space<vmem>>, vector<1x8x8xf32>
    %11 = vector.shape_cast %10 : vector<1x8x8xf32> to vector<8x8xf32>
    %c0_14 = arith.constant 0 : index
    %c1_15 = arith.constant 1 : index
    %12 = vector.load %arg8[%c0_14, %c1_15] : memref<8x384xf32, #tpu.memory_space<vmem>>, vector<8x256xf32>
    %cst_16 = arith.constant dense<0.000000e+00> : vector<8x256xf32>
    %13 = tpu.matmul %11, %12, %cst_16 {dimension_numbers = #tpu.dot_dimension_numbers<[1], [0], [0], [1], [0, 0, 1, 1], [], []>} : vector<8x8xf32>, vector<8x256xf32>, vector<8x256xf32> -> vector<8x256xf32>
    %14 = arith.addf %9, %13 : vector<8x256xf32>
    %c2 = arith.constant 2 : index
    %c0_17 = arith.constant 0 : index
    %c0_18 = arith.constant 0 : index
    %15 = vector.load %arg1[%c2, %c0_17, %c0_18] : memref<9x8x8xf32, #tpu.memory_space<vmem>>, vector<1x8x8xf32>
    %16 = vector.shape_cast %15 : vector<1x8x8xf32> to vector<8x8xf32>
    %c0_19 = arith.constant 0 : index
    %c2_20 = arith.constant 2 : index
    %17 = vector.load %arg8[%c0_19, %c2_20] : memref<8x384xf32, #tpu.memory_space<vmem>>, vector<8x256xf32>
    %cst_21 = arith.constant dense<0.000000e+00> : vector<8x256xf32>
    %18 = tpu.matmul %16, %17, %cst_21 {dimension_numbers = #tpu.dot_dimension_numbers<[1], [0], [0], [1], [0, 0, 1, 1], [], []>} : vector<8x8xf32>, vector<8x256xf32>, vector<8x256xf32> -> vector<8x256xf32>
    %19 = arith.addf %14, %18 : vector<8x256xf32>
    %c3 = arith.constant 3 : index
    %c0_22 = arith.constant 0 : index
    %c0_23 = arith.constant 0 : index
    %20 = vector.load %arg1[%c3, %c0_22, %c0_23] : memref<9x8x8xf32, #tpu.memory_space<vmem>>, vector<1x8x8xf32>
    %21 = vector.shape_cast %20 : vector<1x8x8xf32> to vector<8x8xf32>
    %c0_24 = arith.constant 0 : index
    %c18 = arith.constant 18 : index
    %22 = vector.load %arg8[%c0_24, %c18] : memref<8x384xf32, #tpu.memory_space<vmem>>, vector<8x256xf32>
    %cst_25 = arith.constant dense<0.000000e+00> : vector<8x256xf32>
    %23 = tpu.matmul %21, %22, %cst_25 {dimension_numbers = #tpu.dot_dimension_numbers<[1], [0], [0], [1], [0, 0, 1, 1], [], []>} : vector<8x8xf32>, vector<8x256xf32>, vector<8x256xf32> -> vector<8x256xf32>
    %24 = arith.addf %19, %23 : vector<8x256xf32>
    %c4 = arith.constant 4 : index
    %c0_26 = arith.constant 0 : index
    %c0_27 = arith.constant 0 : index
    %25 = vector.load %arg1[%c4, %c0_26, %c0_27] : memref<9x8x8xf32, #tpu.memory_space<vmem>>, vector<1x8x8xf32>
    %26 = vector.shape_cast %25 : vector<1x8x8xf32> to vector<8x8xf32>
    %c0_28 = arith.constant 0 : index
    %c19 = arith.constant 19 : index
    %27 = vector.load %arg8[%c0_28, %c19] : memref<8x384xf32, #tpu.memory_space<vmem>>, vector<8x256xf32>
    %cst_29 = arith.constant dense<0.000000e+00> : vector<8x256xf32>
    %28 = tpu.matmul %26, %27, %cst_29 {dimension_numbers = #tpu.dot_dimension_numbers<[1], [0], [0], [1], [0, 0, 1, 1], [], []>} : vector<8x8xf32>, vector<8x256xf32>, vector<8x256xf32> -> vector<8x256xf32>
    %29 = arith.addf %24, %28 : vector<8x256xf32>
    %c5 = arith.constant 5 : index
    %c0_30 = arith.constant 0 : index
    %c0_31 = arith.constant 0 : index
    %30 = vector.load %arg1[%c5, %c0_30, %c0_31] : memref<9x8x8xf32, #tpu.memory_space<vmem>>, vector<1x8x8xf32>
    %31 = vector.shape_cast %30 : vector<1x8x8xf32> to vector<8x8xf32>
    %c0_32 = arith.constant 0 : index
    %c20 = arith.constant 20 : index
    %32 = vector.load %arg8[%c0_32, %c20] : memref<8x384xf32, #tpu.memory_space<vmem>>, vector<8x256xf32>
    %cst_33 = arith.constant dense<0.000000e+00> : vector<8x256xf32>
    %33 = tpu.matmul %31, %32, %cst_33 {dimension_numbers = #tpu.dot_dimension_numbers<[1], [0], [0], [1], [0, 0, 1, 1], [], []>} : vector<8x8xf32>, vector<8x256xf32>, vector<8x256xf32> -> vector<8x256xf32>
    %34 = arith.addf %29, %33 : vector<8x256xf32>
    %c6 = arith.constant 6 : index
    %c0_34 = arith.constant 0 : index
    %c0_35 = arith.constant 0 : index
    %35 = vector.load %arg1[%c6, %c0_34, %c0_35] : memref<9x8x8xf32, #tpu.memory_space<vmem>>, vector<1x8x8xf32>
    %36 = vector.shape_cast %35 : vector<1x8x8xf32> to vector<8x8xf32>
    %c0_36 = arith.constant 0 : index
    %c36 = arith.constant 36 : index
    %37 = vector.load %arg8[%c0_36, %c36] : memref<8x384xf32, #tpu.memory_space<vmem>>, vector<8x256xf32>
    %cst_37 = arith.constant dense<0.000000e+00> : vector<8x256xf32>
    %38 = tpu.matmul %36, %37, %cst_37 {dimension_numbers = #tpu.dot_dimension_numbers<[1], [0], [0], [1], [0, 0, 1, 1], [], []>} : vector<8x8xf32>, vector<8x256xf32>, vector<8x256xf32> -> vector<8x256xf32>
    %39 = arith.addf %34, %38 : vector<8x256xf32>
    %c7 = arith.constant 7 : index
    %c0_38 = arith.constant 0 : index
    %c0_39 = arith.constant 0 : index
    %40 = vector.load %arg1[%c7, %c0_38, %c0_39] : memref<9x8x8xf32, #tpu.memory_space<vmem>>, vector<1x8x8xf32>
    %41 = vector.shape_cast %40 : vector<1x8x8xf32> to vector<8x8xf32>
    %c0_40 = arith.constant 0 : index
    %c37 = arith.constant 37 : index
    %42 = vector.load %arg8[%c0_40, %c37] : memref<8x384xf32, #tpu.memory_space<vmem>>, vector<8x256xf32>
    %cst_41 = arith.constant dense<0.000000e+00> : vector<8x256xf32>
    %43 = tpu.matmul %41, %42, %cst_41 {dimension_numbers = #tpu.dot_dimension_numbers<[1], [0], [0], [1], [0, 0, 1, 1], [], []>} : vector<8x8xf32>, vector<8x256xf32>, vector<8x256xf32> -> vector<8x256xf32>
    %44 = arith.addf %39, %43 : vector<8x256xf32>
    %c8 = arith.constant 8 : index
    %c0_42 = arith.constant 0 : index
    %c0_43 = arith.constant 0 : index
    %45 = vector.load %arg1[%c8, %c0_42, %c0_43] : memref<9x8x8xf32, #tpu.memory_space<vmem>>, vector<1x8x8xf32>
    %46 = vector.shape_cast %45 : vector<1x8x8xf32> to vector<8x8xf32>
    %c0_44 = arith.constant 0 : index
    %c38 = arith.constant 38 : index
    %47 = vector.load %arg8[%c0_44, %c38] : memref<8x384xf32, #tpu.memory_space<vmem>>, vector<8x256xf32>
    %cst_45 = arith.constant dense<0.000000e+00> : vector<8x256xf32>
    %48 = tpu.matmul %46, %47, %cst_45 {dimension_numbers = #tpu.dot_dimension_numbers<[1], [0], [0], [1], [0, 0, 1, 1], [], []>} : vector<8x8xf32>, vector<8x256xf32>, vector<8x256xf32> -> vector<8x256xf32>
    %49 = arith.addf %44, %48 : vector<8x256xf32>
    %c0_46 = arith.constant 0 : index
    %c0_47 = arith.constant 0 : index
    %50 = vector.load %arg4[%c0_46, %c0_47] : memref<1x256xf32, #tpu.memory_space<vmem>>, vector<1x256xf32>
    %51 = vector.broadcast %50 : vector<1x256xf32> to vector<8x256xf32>
    %52 = arith.mulf %49, %51 : vector<8x256xf32>
    %c0_48 = arith.constant 0 : index
    %c0_49 = arith.constant 0 : index
    %53 = vector.load %arg5[%c0_48, %c0_49] : memref<8x256xf32, #tpu.memory_space<vmem>>, vector<8x256xf32>
    tpu.vector_store %arg5[%c0_48, %c0_49], %52 {strides = array<i32>} : memref<8x256xf32, #tpu.memory_space<vmem>>, vector<8x256xf32>,
    %cst_50 = arith.constant dense<0.000000e+00> : vector<8xf32>
    %54 = vector.multi_reduction <add>, %52, %cst_50 [1] : vector<8x256xf32> to vector<8xf32>
    %55 = vector.shape_cast %54 : vector<8xf32> to vector<8x1xf32>
    %56 = vector.shape_cast %55 : vector<8x1xf32> to vector<1x8x1xf32>
    %c0_51 = arith.constant 0 : index
    %c0_52 = arith.constant 0 : index
    %c0_53 = arith.constant 0 : index
    %57 = vector.load %arg6[%c0_51, %c0_52, %c0_53] : memref<1x8x1xf32, #tpu.memory_space<vmem>>, vector<1x8x1xf32>
    tpu.vector_store %arg6[%c0_51, %c0_52, %c0_53], %56 {strides = array<i32>} : memref<1x8x1xf32, #tpu.memory_space<vmem>>, vector<1x8x1xf32>,
    %58 = arith.mulf %52, %52 : vector<8x256xf32>
    %cst_54 = arith.constant dense<0.000000e+00> : vector<8xf32>
    %59 = vector.multi_reduction <add>, %58, %cst_54 [1] : vector<8x256xf32> to vector<8xf32>
    %60 = vector.shape_cast %59 : vector<8xf32> to vector<8x1xf32>
    %61 = vector.shape_cast %60 : vector<8x1xf32> to vector<1x8x1xf32>
    %c0_55 = arith.constant 0 : index
    %c0_56 = arith.constant 0 : index
    %c0_57 = arith.constant 0 : index
    %62 = vector.load %arg7[%c0_55, %c0_56, %c0_57] : memref<1x8x1xf32, #tpu.memory_space<vmem>>, vector<1x8x1xf32>
    tpu.vector_store %arg7[%c0_55, %c0_56, %c0_57], %61 {strides = array<i32>} : memref<1x8x1xf32, #tpu.memory_space<vmem>>, vector<1x8x1xf32>,
    return
  }
  func.func @transform_0(%arg0: i32) -> (i32, i32, i32) {
    %c0_i32 = arith.constant 0 : i32
    %c0_i32_0 = arith.constant 0 : i32
    %c0_i32_1 = arith.constant 0 : i32
    %c0_i32_2 = arith.constant 0 : i32
    return %c0_i32, %c0_i32_0, %c0_i32_1 : i32, i32, i32
  }
  func.func @transform_1(%arg0: i32) -> (i32, i32) {
    %c0_i32 = arith.constant 0 : i32
    %c0_i32_0 = arith.constant 0 : i32
    return %c0_i32, %arg0 : i32, i32
  }
  func.func @transform_2(%arg0: i32) -> (i32, i32) {
    %c1_i32 = arith.constant 1 : i32
    %0 = arith.addi %arg0, %c1_i32 : i32
    %c2_i32 = arith.constant 2 : i32
    %1 = arith.muli %0, %c2_i32 : i32
    %c0_i32 = arith.constant 0 : i32
    %c0_i32_0 = arith.constant 0 : i32
    return %c0_i32, %1 : i32, i32
  }
  func.func @transform_3(%arg0: i32) -> (i32, i32) {
    %c0_i32 = arith.constant 0 : i32
    %c0_i32_0 = arith.constant 0 : i32
    return %c0_i32, %arg0 : i32, i32
  }
  func.func @transform_4(%arg0: i32) -> (i32, i32) {
    %c0_i32 = arith.constant 0 : i32
    %c0_i32_0 = arith.constant 0 : i32
    return %c0_i32, %arg0 : i32, i32
  }
  func.func @transform_5(%arg0: i32) -> (i32, i32, i32) {
    %c0_i32 = arith.constant 0 : i32
    %c0_i32_0 = arith.constant 0 : i32
    %c0_i32_1 = arith.constant 0 : i32
    return %arg0, %c0_i32, %c0_i32_0 : i32, i32, i32
  }
  func.func @transform_6(%arg0: i32) -> (i32, i32, i32) {
    %c0_i32 = arith.constant 0 : i32
    %c0_i32_0 = arith.constant 0 : i32
    %c0_i32_1 = arith.constant 0 : i32
    return %arg0, %c0_i32, %c0_i32_0 : i32, i32, i32
  }
}

</mosaic_0001>

<bundles_post_ra>
// kernel: tpu_custom_call.1
= control target key start
LH: loop header
LB: loop body
LE: loop exit
PB: predicated region body
PF: predicated region fallthrough
CT: control target
= control target key end

     0   :  { %12 = vsyncpa [#allocation4], 0  ;;  %s1729_s0 = inlined_call_operand.vmem [shape: f32[9,8,8], index: 0, kind: input, shape index: {}]   ;;  %s1730_s1 = inlined_call_operand.vmem [shape: f32[8,896], index: 1, kind: input, shape index: {}]   ;;  %s1731_s2 = inlined_call_operand.vmem [shape: f32[8,896], index: 2, kind: input, shape index: {}]   ;;  %s1732_s3 = inlined_call_operand.vmem [shape: f32[1,768], index: 3, kind: input, shape index: {}]   ;;  %s1733_s4 = inlined_call_operand.hbm [shape: f32[8,768], index: 4, kind: output, shape index: {0}]   ;;  %s1734_s5 = inlined_call_operand.vmem [shape: f32[3,8,1], index: 5, kind: output, shape index: {1}]   ;;  %s1735_s6 = inlined_call_operand.vmem [shape: f32[3,8,1], index: 6, kind: output, shape index: {2}]  }
   0x1   :  { %14 = vsyncpa [#allocation4 + $0x1], 0  ;;  %s1544_s21 = smov 0   ;;  %s1546_s22 = smov 0  }
   0x2   :  { %s1548_s23 = smov 0   ;;  %s1550_s24 = smov 0  }
   0x3 LB: > { %s1565_s25 = sadd.s32 4294967295, %s1497_s24   ;;  %s1328_s26 = sadd.s32 4294967294, %s1497_s24   ;;  %s1497_s24 = sphi %s1550_s24, %s1741_s24   ;;  %s1493_s23 = sphi %s1548_s23, %s1740_s23   ;;  %s1489_s22 = sphi %s1546_s22, %s1739_s22   ;;  %s1485_s21 = sphi %s1544_s21, %s1738_s21  }
   0x4   : > { %s1569_s27 = sadd.s32 1, %s1497_s24   ;;  %s130_s28 = sadd.s32 1, %s1493_s23 }
   0x5   : > { %s127_s29 = ssub.s32 %s1497_s24, %s1569_s27  ;;  %p140_p0 = scmp.ne.s32.totalorder %s1493_s23, %s1489_s22 }
   0x6   : > { %p128_p1 = scmp.eq.s32.totalorder %s127_s29, 0  ;;  %p141_p2 = scmp.eq.s32.totalorder %s1565_s25, 2 }
   0x7   : > { %p146_p3 = scmp.ne.s32.totalorder %s1489_s22, %s1485_s21  ;;  %p147_p4 = scmp.eq.s32.totalorder %s1328_s26, 2 }
   0x8   : > { %s1580_s30 = scalar_select %p128_p1, %s1493_s23, %s130_s28  }
   0x9   : > { %p1582_p5 = por %p141_p2, %p140_p0  ;;  %p1586_p6 = por %p147_p4, %p146_p3 }
   0xa   : > { %p1333_p7 = scmp.ge.s32.totalorder %s1497_s24, 1  ;;  %p256_p8 = scmp.lt.s32.totalorder %s1497_s24, 4 }
   0xc   : > { %p257_p9 = pnand %p1333_p7, %p256_p8 }
   0xd   : > { %s1593_s9 = sshll.u32 (!%p257_p9), %s1565_s25, 1  ;;  %s1499_s20 = smov (!%p257_p9), 109   ;;  %v1500_v3 = vmov (!%p257_p9), 0.0   ;;  %vm707_vm0 = vcmask (!%p257_p9), 891904   ;;  %vm372_vm1 = vcmask (!%p257_p9), 64512   ;;  %v1349_v9 = vld [vmem:[%s1729_s0 + $0x20] sm:$0xff] (!%p257_p9)  ;;  %v1146_v53 = vlaneseq (!%p257_p9) }
   0xe   : > { %260 = sbr.rel (%p257_p9) target bundleno = 551 (0x227), region = 36  ;;  %p313_p10 = scmp.lt.s32.totalorder (!%p257_p9), %s1593_s9, 6  ;;  %779 = vmatprep.mubr.f32.mxu0 (!%p257_p9), %v1500_v3  ;;  %440 = vmatprep.mubr.f32.mxu1 (!%p257_p9), %v1500_v3  ;;  %vm367_vm2 = vcmask (!%p257_p9), 1039360   ;;  %vm796_vm3 = vcmask (!%p257_p9), 883712   ;;  %v1342_v16 = vld [vmem:[%s1729_s0 + $0x8] sm:$0xff] (!%p257_p9)  ;;  %vm885_vm4 = vcmask (!%p257_p9), 752640  }
   0xf   : > { %s1369_s10 = sadd.s32 (!%p257_p9), 2, %s1593_s9  ;;  %s1501_s26 = smov (!%p257_p9), 127   ;;  %v1351_v21 = vld [vmem:[%s1729_s0 + $0x28] sm:$0xff] (!%p257_p9)  ;;  %v350_v25 = vld [vmem:[%s1729_s0] sm:$0xff] (!%p257_p9)  ;;  %vm529_vm5 = vcmask (!%p257_p9), 1031168   ;;  %v1353_v30 = vld [vmem:[%s1729_s0 + $0x30] sm:$0xff] (!%p257_p9) }
  0x10   : > { %p324_p11 = scmp.lt.s32.totalorder (!%p257_p9), %s1369_s10, 6  ;;  %s1502_s28 = smov (!%p257_p9), 108   ;;  %vm974_vm6 = vcmask (!%p257_p9), 744448   ;;  %v1345_v37 = vld [vmem:[%s1729_s0 + $0x10] sm:$0xff] (!%p257_p9)  ;;  %v1355_v38 = vld [vmem:[%s1729_s0 + $0x38] sm:$0xff] (!%p257_p9)  ;;  %vm618_vm7 = vcmask (!%p257_p9), 900096  }
  0x11   : > { %s1503_s29 = smov (!%p257_p9), 92   ;;  %s1507_s13 = smov (!%p257_p9), 90   ;;  %vm1063_vm8 = vcmask (!%p257_p9), 736256   ;;  %v1347_v49 = vld [vmem:[%s1729_s0 + $0x18] sm:$0xff] (!%p257_p9)  ;;  %v1357_v50 = vld [vmem:[%s1729_s0 + $0x40] sm:$0xff] (!%p257_p9)  ;;  %v1147_v54 = vshrl.u32 (!%p257_p9), %v1146_v53, 7 }
  0x12   : > { %p331_p12 = scmp.lt.s32.totalorder (!%p257_p9), %s1593_s9, 5 }
  0x13   : > { %v1148_v55 = vsub.s32 (!%p257_p9), 0, %v1147_v54  ;;  %v1152_v57 = vsub.s32 (!%p257_p9), 1, %v1147_v54 }
  0x15   : > { %s314_s11 = scalar_select %p313_p10, %s1593_s9, 6 }
  0x16   : > { %s1743_s10 = smov (!%p324_p11, %s1369_s10), 6  ;;  %s1745_s9 = smov (!%p331_p12, %s1593_s9), 5 }
  0x17   : > { %s1336_s12 = sshll.u32 %s314_s11, 3  ;;  %s1338_s16 = sshll.u32 %s1743_s10, 3 }
  0x18   : > { %s316_s15 = scalar_lea.vmem %s1730_s1, %s1336_s12  ;;  %s327_s19 = scalar_lea.vmem %s1731_s2, %s1338_s16 }
  0x19   : > { %v1601_v0 = vld [vmem:[%s316_s15 + $0x8] sm:$0xff]  ;;  %v1603_v1 = vld [vmem:[%s316_s15] sm:$0xff]  ;;  %s1504_s10 = smov 126   ;;  %s1505_s11 = smov 91  }
  0x1a   : > { %703 = vrot.lane.b32.xlu0 %v1601_v0, %s1499_s20  ;;  %701 = vrot.lane.b32.xlu1 %v1603_v1, %s1499_s20  ;;  %v348_v2 = vld [vmem:[%s327_s19] sm:$0xff]  ;;  %s1506_s12 = smov 110   ;;  %s1508_s16 = smov [#allocation3]  }
  0x1b   : > { %s1439_s17 = sshll.u32 %s1508_s16, 4  ;;  %s1440_s17 = int_to_ptr.vmem [resolvable:$false] %s1439_s17 }
  0x1c   : > { %s1441_s18 = scalar_lea.vmem %s1440_s17, 512 }
  0x1e   : > { %705 = vrot.lane.b32.xlu0 %v348_v2, %s1499_s20  ;;  %363 = vrot.lane.b32.xlu1 %v1601_v0, %s1501_s26  ;;  %s333_s20 = scalar_lea.vmem %s1732_s3, %s1745_s9  ;;  %s1370_s9 = sshll.u32 %s1565_s25, 8 }
  0x1f   : > { %v1144_v56 = vld [vmem:[%s333_s20] sm:$0x3] }
  0x20   : > { %v1149_v58 = vrot.slane %v1144_v56, %v1148_v55  ;;  %v1153_v61 = vrot.slane %v1144_v56, %v1152_v57 }
  0x22   : > { %365 = vrot.lane.b32.xlu0 %v348_v2, %s1501_s26  ;;  %792 = vrot.lane.b32.xlu1 %v1601_v0, %s1502_s28 }
  0x26   : > { %794 = vrot.lane.b32.xlu0 %v348_v2, %s1502_s28  ;;  %361 = vrot.lane.b32.xlu1 %v1603_v1, %s1501_s26  ;;  %s293_s26 = sand.u32 1, %s1489_s22  }
  0x27   : > { %s1172_s14 = scalar_lea.sflag [#allocation4], %s293_s26 }
  0x2a   : > { %790 = vrot.lane.b32.xlu0 %v1603_v1, %s1502_s28  ;;  %881 = vrot.lane.b32.xlu1 %v1601_v0, %s1503_s29  ;;  %s1334_s28 = sshll.u32 %s293_s26, 4 }
  0x2e   : > { %883 = vrot.lane.b32.xlu0 %v348_v2, %s1503_s29  ;;  %879 = vrot.lane.b32.xlu1 %v1603_v1, %s1503_s29  ;;  %s295_s29 = scalar_lea.vmem [#allocation3], %s1334_s28 }
  0x32   : > { %525 = vrot.lane.b32.xlu0 %v1601_v0, %s1504_s10  ;;  %527 = vrot.lane.b32.xlu1 %v348_v2, %s1504_s10 }
  0x36   : > { %970 = vrot.lane.b32.xlu0 %v1601_v0, %s1505_s11  ;;  %972 = vrot.lane.b32.xlu1 %v348_v2, %s1505_s11 }
  0x3a   : > { %523 = vrot.lane.b32.xlu0 %v1603_v1, %s1504_s10  ;;  %968 = vrot.lane.b32.xlu1 %v1603_v1, %s1505_s11 }
  0x3e   : > { %614 = vrot.lane.b32.xlu0 %v1601_v0, %s1506_s12  ;;  %616 = vrot.lane.b32.xlu1 %v348_v2, %s1506_s12 }
  0x42   : > { %1059 = vrot.lane.b32.xlu0 %v1601_v0, %s1507_s13  ;;  %1061 = vrot.lane.b32.xlu1 %v348_v2, %s1507_s13 }
  0x46   : > { %612 = vrot.lane.b32.xlu0 %v1603_v1, %s1506_s12  ;;  %1057 = vrot.lane.b32.xlu1 %v1603_v1, %s1507_s13  ;;  %s1685_s12 = scalar_lea.hbm %s1733_s4, %s1370_s9  ;;  %s1194_s13 = sshll.u32 %s295_s29, 4  ;;  %s1195_s13 = int_to_ptr.vmem [resolvable:$true] %s1194_s13 }
  0x47   : > { %s1435_s15 = scalar_lea.vmem %s1195_s13, 256  ;;  %p1442_p2 = scmp.lt.s32.totalorder %s1195_s13, %s1440_s17 }
  0x48   : > { %p1436_p13 = scmp.ne.s32.totalorder %s1195_s13, %s1435_s15  ;;  %p1443_p3 = scmp.lt.s32.totalorder %s1441_s18, %s1435_s15 }
  0x4a   : > { %p1437_p0 = pnand %p1436_p13, %p1582_p5  ;;  %p1444_p4 = por %p1443_p3, %p1442_p2 }
  0x4c   : > { %p1438_p1 = pneg %p1437_p0 }
  0x4e   : > { %p1445_p7 = pnand %p1444_p4, %p1438_p1 }
  0x8c   : > { %v704_v4 = vpop.permute.xlu0 %703  ;;  %v702_v5 = vpop.permute.xlu1 %701 }
  0x8d   : > { %v708_v10 = vsel %vm707_vm0, %v702_v5, %v704_v4 }
  0x90   : > { %v706_v6 = vpop.permute.xlu0 %705  ;;  %v364_v7 = vpop.permute.xlu1 %363 }
  0x91   : > { %v709_v8 = vsel %vm707_vm0, %v704_v4, %v706_v6 }
  0x92   : > { %715 = vmatprep.subr.mxu0 %v709_v8 }
  0x93   : > { %716 = vmatpush1.msra.mxu0 %v708_v10 }
  0x94   : > { %v366_v11 = vpop.permute.xlu0 %365  ;;  %v793_v12 = vpop.permute.xlu1 %792  ;;  %1350 = vmatmul.mubr.msk.f32.vlgmr.msra.gmra.mrb[0].mxu0 %vm372_vm1, %v1349_v9 }
  0x95   : > { %v369_v13 = vsel %vm367_vm2, %v364_v7, %v366_v11  ;;  %868 = vmatprep.mubr.f32.mxu0 %v1500_v3 }
  0x96   : > { %376 = vmatprep.subr.mxu1 %v369_v13 }
  0x98   : > { %v795_v14 = vpop.permute.xlu0 %794  ;;  %v362_v15 = vpop.permute.xlu1 %361 }
  0x99   : > { %v368_v17 = vsel %vm367_vm2, %v362_v15, %v364_v7  ;;  %v798_v18 = vsel %vm796_vm3, %v793_v12, %v795_v14 }
  0x9a   : > { %377 = vmatpush1.msra.mxu1 %v368_v17  ;;  %804 = vmatprep.subr.mxu0 %v798_v18 }
  0x9b   : > { %1343 = vmatmul.mubr.msk.f32.vlgmr.msra.gmra.mrb[0].mxu1 %vm372_vm1, %v1342_v16  ;;  %450 = vmatprep.subr.mxu1 %v1601_v0 }
  0x9c   : > { %v791_v19 = vpop.permute.xlu0 %790  ;;  %v882_v20 = vpop.permute.xlu1 %881  ;;  %451 = vmatpush1.msra.mxu1 %v1603_v1  ;;  %514 = vmatprep.mubr.f32.mxu1 %v1500_v3 }
  0x9d   : > { %v797_v22 = vsel %vm796_vm3, %v791_v19, %v793_v12 }
  0x9e   : > { %805 = vmatpush1.msra.mxu0 %v797_v22 }
  0x9f   : > { %1352 = vmatmul.mubr.msk.f32.vlgmr.msra.gmra.mrb[0].mxu0 %vm372_vm1, %v1351_v21 }
  0xa0   : > { %v884_v23 = vpop.permute.xlu0 %883  ;;  %v880_v24 = vpop.permute.xlu1 %879  ;;  %957 = vmatprep.mubr.f32.mxu0 %v1500_v3 }
  0xa1   : > { %v886_v26 = vsel %vm885_vm4, %v880_v24, %v882_v20  ;;  %v887_v27 = vsel %vm885_vm4, %v882_v20, %v884_v23 }
  0xa2   : > { %893 = vmatprep.subr.mxu0 %v887_v27 }
  0xa3   : > { %894 = vmatpush1.msra.mxu0 %v886_v26  ;;  %1344 = vmatmul.mubr.msk.f32.vlgmr.msra.gmra.mrb[0].mxu1 %vm372_vm1, %v350_v25 }
  0xa4   : > { %v526_v28 = vpop.permute.xlu0 %525  ;;  %v528_v29 = vpop.permute.xlu1 %527  ;;  %601 = vmatprep.mubr.f32.mxu1 %v1500_v3 }
  0xa5   : > { %v531_v31 = vsel %vm529_vm5, %v526_v28, %v528_v29 }
  0xa6   : > { %537 = vmatprep.subr.mxu1 %v531_v31 }
  0xa7   : > { %1354 = vmatmul.mubr.msk.f32.vlgmr.msra.gmra.mrb[0].mxu0 %vm372_vm1, %v1353_v30 }
  0xa8   : > { %v971_v32 = vpop.permute.xlu0 %970  ;;  %v973_v33 = vpop.permute.xlu1 %972  ;;  %1046 = vmatprep.mubr.f32.mxu0 %v1500_v3 }
  0xa9   : > { %v976_v34 = vsel %vm974_vm6, %v971_v32, %v973_v33 }
  0xaa   : > { %982 = vmatprep.subr.mxu0 %v976_v34 }
  0xac   : > { %v524_v35 = vpop.permute.xlu0 %523  ;;  %v969_v36 = vpop.permute.xlu1 %968 }
  0xad   : > { %v530_v39 = vsel %vm529_vm5, %v524_v35, %v526_v28  ;;  %v975_v40 = vsel %vm974_vm6, %v969_v36, %v971_v32 }
  0xae   : > { %538 = vmatpush1.msra.mxu1 %v530_v39  ;;  %983 = vmatpush1.msra.mxu0 %v975_v40 }
  0xaf   : > { %1346 = vmatmul.mubr.msk.f32.vlgmr.msra.gmra.mrb[0].mxu1 %vm372_vm1, %v1345_v37  ;;  %1356 = vmatmul.mubr.msk.f32.vlgmr.msra.gmra.mrb[0].mxu0 %vm372_vm1, %v1355_v38 }
  0xb0   : > { %v615_v41 = vpop.permute.xlu0 %614  ;;  %v617_v42 = vpop.permute.xlu1 %616  ;;  %690 = vmatprep.mubr.f32.mxu1 %v1500_v3  ;;  %1135 = vmatprep.mubr.f32.mxu0 %v1500_v3 }
  0xb1   : > { %v620_v43 = vsel %vm618_vm7, %v615_v41, %v617_v42 }
  0xb2   : > { %626 = vmatprep.subr.mxu1 %v620_v43 }
  0xb4   : > { %v1060_v44 = vpop.permute.xlu0 %1059  ;;  %v1062_v45 = vpop.permute.xlu1 %1061 }
  0xb5   : > { %v1065_v46 = vsel %vm1063_vm8, %v1060_v44, %v1062_v45 }
  0xb6   : > { %1071 = vmatprep.subr.mxu0 %v1065_v46 }
  0xb8   : > { %v613_v47 = vpop.permute.xlu0 %612  ;;  %v1058_v48 = vpop.permute.xlu1 %1057 }
  0xb9   : > { %v619_v51 = vsel %vm618_vm7, %v613_v47, %v615_v41  ;;  %v1064_v52 = vsel %vm1063_vm8, %v1058_v48, %v1060_v44 }
  0xba   : > { %627 = vmatpush1.msra.mxu1 %v619_v51  ;;  %1072 = vmatpush1.msra.mxu0 %v1064_v52 }
  0xbb   : > { %1348 = vmatmul.mubr.msk.f32.vlgmr.msra.gmra.mrb[0].mxu1 %vm372_vm1, %v1347_v49  ;;  %1358 = vmatmul.mubr.msk.f32.vlgmr.msra.gmra.mrb[0].mxu0 %vm372_vm1, %v1357_v50 }
 0x18e   : > { %v692_v59 = vpop.f32.mrb[0].mxu1  ;;  %v1137_v60 = vpop.f32.mrb[0].mxu0 }
 0x18f   : > { %v1371_v62 = vadd.f32 %v1137_v60, %v692_v59  ;;  %v694_v63 = vpop.f32.mrb[1].mxu1  ;;  %v1139_v0 = vpop.f32.mrb[1].mxu0 }
 0x190   : > { %v1372_v1 = vadd.f32 %v1139_v0, %v694_v63 }
 0x191   : > { %v1156_v2 = vmul.f32 %v1371_v62, %v1149_v58 }
 0x192   : > { %v1157_v3 = vmul.f32 %v1372_v1, %v1153_v61 }
 0x193   : > { %v1165_v4 = vmul.f32 %v1156_v2, %v1156_v2  ;;  %1158 = vst [vmem:[%s295_s29] sm:$0xff] %v1156_v2 }
 0x194   : > { %v1160_v5 = vadd.f32 %v1157_v3, %v1156_v2  ;;  %v1166_v6 = vmul.f32 %v1157_v3, %v1157_v3  ;;  %1159 = vst [vmem:[%s295_s29 + $0x8] sm:$0xff] %v1157_v3 }
 0x196   : > { %1161 = vadd.xlane.f32.xlu0 %v1160_v5  ;;  %v1167_v7 = vadd.f32 %v1166_v6, %v1165_v4 }
 0x198   : > { %1168 = vadd.xlane.f32.xlu1 %v1167_v7 }
 0x199   : > { %1448 = shalt.err (!%p1445_p7)
}
 0x19a   : > { %s1449_s19 = scalar_lea.hbm %s1685_s12, 256  ;;  %s1453_s28 = scalar_lea.hbm %s1733_s4, 768 }
 0x19b   : > { %p1450_p8 = scmp.ne.s32.totalorder %s1685_s12, %s1449_s19  ;;  %p1454_p11 = scmp.lt.u32.totalorder %s1685_s12, %s1733_s4 }
 0x19c   : > { %p1455_p12 = scmp.lt.u32.totalorder %s1453_s28, %s1449_s19  ;;  %p1457_p0 = scmp.lt.u32.totalorder %s1449_s19, %s1685_s12 }
 0x19d   : > { %p1451_p9 = pnand %p1450_p8, %p1582_p5 }
 0x19e   : > { %p1456_p13 = por %p1455_p12, %p1454_p11 }
 0x19f   : > { %p1452_p10 = pneg %p1451_p9 }
 0x1a0   : > { %p1458_p1 = por %p1457_p0, %p1456_p13 }
 0x1a2   : > { %p1459_p2 = pnand %p1458_p1, %p1452_p10 }
 0x1a4   : > { %1462 = shalt.err (!%p1459_p2)
}
 0x1a5   : > { %1387 = dma.vmem_to_hbm [thread:$0]  (%p1582_p5), %s1195_s13, 256, %s1685_s12, %s1172_s14   ;;  %vm1163_vm9 = vcmask 7168  }
 0x1a6   : > { %p336_p3 = scmp.lt.s32.totalorder %s1565_s25, 2 }
 0x1a8   : > { %s1747_s25 = smov (!%p336_p3, %s1565_s25), 2 }
 0x1a9   : > { %s1340_s10 = sshll.u32 %s1747_s25, 3 }
 0x1aa   : > { %s339_s16 = scalar_lea.vmem %s1734_s5, %s1340_s10  ;;  %s343_s19 = scalar_lea.vmem %s1735_s6, %s1340_s10 }
 0x223   : > { %v1162_v8 = vpop.xlane.xlu0 %1161 }
 0x224   : > { %1164 = vst.msk [vmem:[%s339_s16] sm:$0xff] %vm1163_vm9, %v1162_v8 }
 0x225   : > { %v1169_v9 = vpop.xlane.xlu1 %1168 }
 0x226   : > { %1170 = vst.msk [vmem:[%s343_s19] sm:$0xff] %vm1163_vm9, %v1169_v9 }
 0x227 PF: > { %p1393_p5 = scmp.ge.s32.totalorder %s1497_s24, 2  ;;  %s1212_s7 = sand.u32 1, %s1485_s21  }
 0x228   : > { %s1213_s25 = scalar_lea.sflag [#allocation4], %s1212_s7 }
 0x229   : > { %p1390_p4 = pnand %p1393_p5, %p1586_p6 }
 0x22b   : > { %1480 = dma.done.wait (!%p1390_p4), %s1213_s25, 256  }
 0x22c   : > { %1482 = vsyncadd (!%p1390_p4), %s1213_s25, 4294967040  ;;  %p17_p7 = scmp.ge.s32.totalorder %s1569_s27, 5   ;;  %s1738_s21 = smov %s1489_s22 }
 0x22d   : > { %s1739_s22 = smov %s1493_s23  ;;  %s1740_s23 = smov %s1580_s30 }
 0x22e   : > { %s1741_s24 = smov %s1569_s27  ;;  %19 = sbr.rel (!%p17_p7) target bundleno = 3 (0x3), region = 109 }
 0x235   :  { %1232 = vsyncpa [#allocation4], 1 }
 0x236   :  { %1234 = vsyncpa [#allocation4 + $0x1], 1 }

// kernel: tpu_custom_call.1
= control target key start
LH: loop header
LB: loop body
LE: loop exit
PB: predicated region body
PF: predicated region fallthrough
CT: control target
= control target key end

     0   :  { %12 = vsyncpa [#allocation4], 0  ;;  %s1729_s0 = inlined_call_operand.vmem [shape: f32[9,8,8], index: 0, kind: input, shape index: {}]   ;;  %s1730_s1 = inlined_call_operand.vmem [shape: f32[8,896], index: 1, kind: input, shape index: {}]   ;;  %s1731_s2 = inlined_call_operand.vmem [shape: f32[8,896], index: 2, kind: input, shape index: {}]   ;;  %s1732_s3 = inlined_call_operand.vmem [shape: f32[1,768], index: 3, kind: input, shape index: {}]   ;;  %s1733_s4 = inlined_call_operand.hbm [shape: f32[8,768], index: 4, kind: output, shape index: {0}]   ;;  %s1734_s5 = inlined_call_operand.vmem [shape: f32[3,8,1], index: 5, kind: output, shape index: {1}]   ;;  %s1735_s6 = inlined_call_operand.vmem [shape: f32[3,8,1], index: 6, kind: output, shape index: {2}]  }
   0x1   :  { %14 = vsyncpa [#allocation4 + $0x1], 0  ;;  %s1544_s21 = smov 0   ;;  %s1546_s22 = smov 0  }
   0x2   :  { %s1548_s23 = smov 0   ;;  %s1550_s24 = smov 0  }
   0x3 LB: > { %s1565_s25 = sadd.s32 4294967295, %s1497_s24   ;;  %s1328_s26 = sadd.s32 4294967294, %s1497_s24   ;;  %s1497_s24 = sphi %s1550_s24, %s1741_s24   ;;  %s1493_s23 = sphi %s1548_s23, %s1740_s23   ;;  %s1489_s22 = sphi %s1546_s22, %s1739_s22   ;;  %s1485_s21 = sphi %s1544_s21, %s1738_s21  }
   0x4   : > { %s1569_s27 = sadd.s32 1, %s1497_s24   ;;  %s130_s28 = sadd.s32 1, %s1493_s23 }
   0x5   : > { %s127_s29 = ssub.s32 %s1497_s24, %s1569_s27  ;;  %p140_p0 = scmp.ne.s32.totalorder %s1493_s23, %s1489_s22 }
   0x6   : > { %p128_p1 = scmp.eq.s32.totalorder %s127_s29, 0  ;;  %p141_p2 = scmp.eq.s32.totalorder %s1565_s25, 2 }
   0x7   : > { %p146_p3 = scmp.ne.s32.totalorder %s1489_s22, %s1485_s21  ;;  %p147_p4 = scmp.eq.s32.totalorder %s1328_s26, 2 }
   0x8   : > { %s1580_s30 = scalar_select %p128_p1, %s1493_s23, %s130_s28  }
   0x9   : > { %p1582_p5 = por %p141_p2, %p140_p0  ;;  %p1586_p6 = por %p147_p4, %p146_p3 }
   0xa   : > { %p1333_p7 = scmp.ge.s32.totalorder %s1497_s24, 1  ;;  %p256_p8 = scmp.lt.s32.totalorder %s1497_s24, 4 }
   0xc   : > { %p257_p9 = pnand %p1333_p7, %p256_p8 }
   0xd   : > { %s1593_s9 = sshll.u32 (!%p257_p9), %s1565_s25, 1  ;;  %s1499_s20 = smov (!%p257_p9), 109   ;;  %v1500_v3 = vmov (!%p257_p9), 0.0   ;;  %vm707_vm0 = vcmask (!%p257_p9), 891904   ;;  %vm372_vm1 = vcmask (!%p257_p9), 64512   ;;  %v1349_v9 = vld [vmem:[%s1729_s0 + $0x20] sm:$0xff] (!%p257_p9)  ;;  %v1146_v53 = vlaneseq (!%p257_p9) }
   0xe   : > { %260 = sbr.rel (%p257_p9) target bundleno = 551 (0x227), region = 36  ;;  %p313_p10 = scmp.lt.s32.totalorder (!%p257_p9), %s1593_s9, 6  ;;  %779 = vmatprep.mubr.f32.mxu0 (!%p257_p9), %v1500_v3  ;;  %440 = vmatprep.mubr.f32.mxu1 (!%p257_p9), %v1500_v3  ;;  %vm367_vm2 = vcmask (!%p257_p9), 1039360   ;;  %vm796_vm3 = vcmask (!%p257_p9), 883712   ;;  %v1342_v16 = vld [vmem:[%s1729_s0 + $0x8] sm:$0xff] (!%p257_p9)  ;;  %vm885_vm4 = vcmask (!%p257_p9), 752640  }
   0xf   : > { %s1369_s10 = sadd.s32 (!%p257_p9), 2, %s1593_s9  ;;  %s1501_s26 = smov (!%p257_p9), 127   ;;  %v1351_v21 = vld [vmem:[%s1729_s0 + $0x28] sm:$0xff] (!%p257_p9)  ;;  %v350_v25 = vld [vmem:[%s1729_s0] sm:$0xff] (!%p257_p9)  ;;  %vm529_vm5 = vcmask (!%p257_p9), 1031168   ;;  %v1353_v30 = vld [vmem:[%s1729_s0 + $0x30] sm:$0xff] (!%p257_p9) }
  0x10   : > { %p324_p11 = scmp.lt.s32.totalorder (!%p257_p9), %s1369_s10, 6  ;;  %s1502_s28 = smov (!%p257_p9), 108   ;;  %vm974_vm6 = vcmask (!%p257_p9), 744448   ;;  %v1345_v37 = vld [vmem:[%s1729_s0 + $0x10] sm:$0xff] (!%p257_p9)  ;;  %v1355_v38 = vld [vmem:[%s1729_s0 + $0x38] sm:$0xff] (!%p257_p9)  ;;  %vm618_vm7 = vcmask (!%p257_p9), 900096  }
  0x11   : > { %s1503_s29 = smov (!%p257_p9), 92   ;;  %s1507_s13 = smov (!%p257_p9), 90   ;;  %vm1063_vm8 = vcmask (!%p257_p9), 736256   ;;  %v1347_v49 = vld [vmem:[%s1729_s0 + $0x18] sm:$0xff] (!%p257_p9)  ;;  %v1357_v50 = vld [vmem:[%s1729_s0 + $0x40] sm:$0xff] (!%p257_p9)  ;;  %v1147_v54 = vshrl.u32 (!%p257_p9), %v1146_v53, 7 }
  0x12   : > { %p331_p12 = scmp.lt.s32.totalorder (!%p257_p9), %s1593_s9, 5 }
  0x13   : > { %v1148_v55 = vsub.s32 (!%p257_p9), 0, %v1147_v54  ;;  %v1152_v57 = vsub.s32 (!%p257_p9), 1, %v1147_v54 }
  0x15   : > { %s314_s11 = scalar_select %p313_p10, %s1593_s9, 6 }
  0x16   : > { %s1743_s10 = smov (!%p324_p11, %s1369_s10), 6  ;;  %s1745_s9 = smov (!%p331_p12, %s1593_s9), 5 }
  0x17   : > { %s1336_s12 = sshll.u32 %s314_s11, 3  ;;  %s1338_s16 = sshll.u32 %s1743_s10, 3 }
  0x18   : > { %s316_s15 = scalar_lea.vmem %s1730_s1, %s1336_s12  ;;  %s327_s19 = scalar_lea.vmem %s1731_s2, %s1338_s16 }
  0x19   : > { %v1601_v0 = vld [vmem:[%s316_s15 + $0x8] sm:$0xff]  ;;  %v1603_v1 = vld [vmem:[%s316_s15] sm:$0xff]  ;;  %s1504_s10 = smov 126   ;;  %s1505_s11 = smov 91  }
  0x1a   : > { %703 = vrot.lane.b32.xlu0 %v1601_v0, %s1499_s20  ;;  %701 = vrot.lane.b32.xlu1 %v1603_v1, %s1499_s20  ;;  %v348_v2 = vld [vmem:[%s327_s19] sm:$0xff]  ;;  %s1506_s12 = smov 110   ;;  %s1508_s16 = smov [#allocation3]  }
  0x1b   : > { %s1439_s17 = sshll.u32 %s1508_s16, 4  ;;  %s1440_s17 = int_to_ptr.vmem [resolvable:$false] %s1439_s17 }
  0x1c   : > { %s1441_s18 = scalar_lea.vmem %s1440_s17, 512 }
  0x1e   : > { %705 = vrot.lane.b32.xlu0 %v348_v2, %s1499_s20  ;;  %363 = vrot.lane.b32.xlu1 %v1601_v0, %s1501_s26  ;;  %s333_s20 = scalar_lea.vmem %s1732_s3, %s1745_s9  ;;  %s1370_s9 = sshll.u32 %s1565_s25, 8 }
  0x1f   : > { %v1144_v56 = vld [vmem:[%s333_s20] sm:$0x3] }
  0x20   : > { %v1149_v58 = vrot.slane %v1144_v56, %v1148_v55  ;;  %v1153_v61 = vrot.slane %v1144_v56, %v1152_v57 }
  0x22   : > { %365 = vrot.lane.b32.xlu0 %v348_v2, %s1501_s26  ;;  %792 = vrot.lane.b32.xlu1 %v1601_v0, %s1502_s28 }
  0x26   : > { %794 = vrot.lane.b32.xlu0 %v348_v2, %s1502_s28  ;;  %361 = vrot.lane.b32.xlu1 %v1603_v1, %s1501_s26  ;;  %s293_s26 = sand.u32 1, %s1489_s22  }
  0x27   : > { %s1172_s14 = scalar_lea.sflag [#allocation4], %s293_s26 }
  0x2a   : > { %790 = vrot.lane.b32.xlu0 %v1603_v1, %s1502_s28  ;;  %881 = vrot.lane.b32.xlu1 %v1601_v0, %s1503_s29  ;;  %s1334_s28 = sshll.u32 %s293_s26, 4 }
  0x2e   : > { %883 = vrot.lane.b32.xlu0 %v348_v2, %s1503_s29  ;;  %879 = vrot.lane.b32.xlu1 %v1603_v1, %s1503_s29  ;;  %s295_s29 = scalar_lea.vmem [#allocation3], %s1334_s28 }
  0x32   : > { %525 = vrot.lane.b32.xlu0 %v1601_v0, %s1504_s10  ;;  %527 = vrot.lane.b32.xlu1 %v348_v2, %s1504_s10 }
  0x36   : > { %970 = vrot.lane.b32.xlu0 %v1601_v0, %s1505_s11  ;;  %972 = vrot.lane.b32.xlu1 %v348_v2, %s1505_s11 }
  0x3a   : > { %523 = vrot.lane.b32.xlu0 %v1603_v1, %s1504_s10  ;;  %968 = vrot.lane.b32.xlu1 %v1603_v1, %s1505_s11 }
  0x3e   : > { %614 = vrot.lane.b32.xlu0 %v1601_v0, %s1506_s12  ;;  %616 = vrot.lane.b32.xlu1 %v348_v2, %s1506_s12 }
  0x42   : > { %1059 = vrot.lane.b32.xlu0 %v1601_v0, %s1507_s13  ;;  %1061 = vrot.lane.b32.xlu1 %v348_v2, %s1507_s13 }
  0x46   : > { %612 = vrot.lane.b32.xlu0 %v1603_v1, %s1506_s12  ;;  %1057 = vrot.lane.b32.xlu1 %v1603_v1, %s1507_s13  ;;  %s1685_s12 = scalar_lea.hbm %s1733_s4, %s1370_s9  ;;  %s1194_s13 = sshll.u32 %s295_s29, 4  ;;  %s1195_s13 = int_to_ptr.vmem [resolvable:$true] %s1194_s13 }
  0x47   : > { %s1435_s15 = scalar_lea.vmem %s1195_s13, 256  ;;  %p1442_p2 = scmp.lt.s32.totalorder %s1195_s13, %s1440_s17 }
  0x48   : > { %p1436_p13 = scmp.ne.s32.totalorder %s1195_s13, %s1435_s15  ;;  %p1443_p3 = scmp.lt.s32.totalorder %s1441_s18, %s1435_s15 }
  0x4a   : > { %p1437_p0 = pnand %p1436_p13, %p1582_p5  ;;  %p1444_p4 = por %p1443_p3, %p1442_p2 }
  0x4c   : > { %p1438_p1 = pneg %p1437_p0 }
  0x4e   : > { %p1445_p7 = pnand %p1444_p4, %p1438_p1 }
  0x8c   : > { %v704_v4 = vpop.permute.xlu0 %703  ;;  %v702_v5 = vpop.permute.xlu1 %701 }
  0x8d   : > { %v708_v10 = vsel %vm707_vm0, %v702_v5, %v704_v4 }
  0x90   : > { %v706_v6 = vpop.permute.xlu0 %705  ;;  %v364_v7 = vpop.permute.xlu1 %363 }
  0x91   : > { %v709_v8 = vsel %vm707_vm0, %v704_v4, %v706_v6 }
  0x92   : > { %715 = vmatprep.subr.mxu0 %v709_v8 }
  0x93   : > { %716 = vmatpush1.msra.mxu0 %v708_v10 }
  0x94   : > { %v366_v11 = vpop.permute.xlu0 %365  ;;  %v793_v12 = vpop.permute.xlu1 %792  ;;  %1350 = vmatmul.mubr.msk.f32.vlgmr.msra.gmra.mrb[0].mxu0 %vm372_vm1, %v1349_v9 }
  0x95   : > { %v369_v13 = vsel %vm367_vm2, %v364_v7, %v366_v11  ;;  %868 = vmatprep.mubr.f32.mxu0 %v1500_v3 }
  0x96   : > { %376 = vmatprep.subr.mxu1 %v369_v13 }
  0x98   : > { %v795_v14 = vpop.permute.xlu0 %794  ;;  %v362_v15 = vpop.permute.xlu1 %361 }
  0x99   : > { %v368_v17 = vsel %vm367_vm2, %v362_v15, %v364_v7  ;;  %v798_v18 = vsel %vm796_vm3, %v793_v12, %v795_v14 }
  0x9a   : > { %377 = vmatpush1.msra.mxu1 %v368_v17  ;;  %804 = vmatprep.subr.mxu0 %v798_v18 }
  0x9b   : > { %1343 = vmatmul.mubr.msk.f32.vlgmr.msra.gmra.mrb[0].mxu1 %vm372_vm1, %v1342_v16  ;;  %450 = vmatprep.subr.mxu1 %v1601_v0 }
  0x9c   : > { %v791_v19 = vpop.permute.xlu0 %790  ;;  %v882_v20 = vpop.permute.xlu1 %881  ;;  %451 = vmatpush1.msra.mxu1 %v1603_v1  ;;  %514 = vmatprep.mubr.f32.mxu1 %v1500_v3 }
  0x9d   : > { %v797_v22 = vsel %vm796_vm3, %v791_v19, %v793_v12 }
  0x9e   : > { %805 = vmatpush1.msra.mxu0 %v797_v22 }
  0x9f   : > { %1352 = vmatmul.mubr.msk.f32.vlgmr.msra.gmra.mrb[0].mxu0 %vm372_vm1, %v1351_v21 }
  0xa0   : > { %v884_v23 = vpop.permute.xlu0 %883  ;;  %v880_v24 = vpop.permute.xlu1 %879  ;;  %957 = vmatprep.mubr.f32.mxu0 %v1500_v3 }
  0xa1   : > { %v886_v26 = vsel %vm885_vm4, %v880_v24, %v882_v20  ;;  %v887_v27 = vsel %vm885_vm4, %v882_v20, %v884_v23 }
  0xa2   : > { %893 = vmatprep.subr.mxu0 %v887_v27 }
  0xa3   : > { %894 = vmatpush1.msra.mxu0 %v886_v26  ;;  %1344 = vmatmul.mubr.msk.f32.vlgmr.msra.gmra.mrb[0].mxu1 %vm372_vm1, %v350_v25 }
  0xa4   : > { %v526_v28 = vpop.permute.xlu0 %525  ;;  %v528_v29 = vpop.permute.xlu1 %527  ;;  %601 = vmatprep.mubr.f32.mxu1 %v1500_v3 }
  0xa5   : > { %v531_v31 = vsel %vm529_vm5, %v526_v28, %v528_v29 }
  0xa6   : > { %537 = vmatprep.subr.mxu1 %v531_v31 }
  0xa7   : > { %1354 = vmatmul.mubr.msk.f32.vlgmr.msra.gmra.mrb[0].mxu0 %vm372_vm1, %v1353_v30 }
  0xa8   : > { %v971_v32 = vpop.permute.xlu0 %970  ;;  %v973_v33 = vpop.permute.xlu1 %972  ;;  %1046 = vmatprep.mubr.f32.mxu0 %v1500_v3 }
  0xa9   : > { %v976_v34 = vsel %vm974_vm6, %v971_v32, %v973_v33 }
  0xaa   : > { %982 = vmatprep.subr.mxu0 %v976_v34 }
  0xac   : > { %v524_v35 = vpop.permute.xlu0 %523  ;;  %v969_v36 = vpop.permute.xlu1 %968 }
  0xad   : > { %v530_v39 = vsel %vm529_vm5, %v524_v35, %v526_v28  ;;  %v975_v40 = vsel %vm974_vm6, %v969_v36, %v971_v32 }
  0xae   : > { %538 = vmatpush1.msra.mxu1 %v530_v39  ;;  %983 = vmatpush1.msra.mxu0 %v975_v40 }
  0xaf   : > { %1346 = vmatmul.mubr.msk.f32.vlgmr.msra.gmra.mrb[0].mxu1 %vm372_vm1, %v1345_v37  ;;  %1356 = vmatmul.mubr.msk.f32.vlgmr.msra.gmra.mrb[0].mxu0 %vm372_vm1, %v1355_v38 }
  0xb0   : > { %v615_v41 = vpop.permute.xlu0 %614  ;;  %v617_v42 = vpop.permute.xlu1 %616  ;;  %690 = vmatprep.mubr.f32.mxu1 %v1500_v3  ;;  %1135 = vmatprep.mubr.f32.mxu0 %v1500_v3 }
  0xb1   : > { %v620_v43 = vsel %vm618_vm7, %v615_v41, %v617_v42 }
  0xb2   : > { %626 = vmatprep.subr.mxu1 %v620_v43 }
  0xb4   : > { %v1060_v44 = vpop.permute.xlu0 %1059  ;;  %v1062_v45 = vpop.permute.xlu1 %1061 }
  0xb5   : > { %v1065_v46 = vsel %vm1063_vm8, %v1060_v44, %v1062_v45 }
  0xb6   : > { %1071 = vmatprep.subr.mxu0 %v1065_v46 }
  0xb8   : > { %v613_v47 = vpop.permute.xlu0 %612  ;;  %v1058_v48 = vpop.permute.xlu1 %1057 }
  0xb9   : > { %v619_v51 = vsel %vm618_vm7, %v613_v47, %v615_v41  ;;  %v1064_v52 = vsel %vm1063_vm8, %v1058_v48, %v1060_v44 }
  0xba   : > { %627 = vmatpush1.msra.mxu1 %v619_v51  ;;  %1072 = vmatpush1.msra.mxu0 %v1064_v52 }
  0xbb   : > { %1348 = vmatmul.mubr.msk.f32.vlgmr.msra.gmra.mrb[0].mxu1 %vm372_vm1, %v1347_v49  ;;  %1358 = vmatmul.mubr.msk.f32.vlgmr.msra.gmra.mrb[0].mxu0 %vm372_vm1, %v1357_v50 }
 0x18e   : > { %v692_v59 = vpop.f32.mrb[0].mxu1  ;;  %v1137_v60 = vpop.f32.mrb[0].mxu0 }
 0x18f   : > { %v1371_v62 = vadd.f32 %v1137_v60, %v692_v59  ;;  %v694_v63 = vpop.f32.mrb[1].mxu1  ;;  %v1139_v0 = vpop.f32.mrb[1].mxu0 }
 0x190   : > { %v1372_v1 = vadd.f32 %v1139_v0, %v694_v63 }
 0x191   : > { %v1156_v2 = vmul.f32 %v1371_v62, %v1149_v58 }
 0x192   : > { %v1157_v3 = vmul.f32 %v1372_v1, %v1153_v61 }
 0x193   : > { %v1165_v4 = vmul.f32 %v1156_v2, %v1156_v2  ;;  %1158 = vst [vmem:[%s295_s29] sm:$0xff] %v1156_v2 }
 0x194   : > { %v1160_v5 = vadd.f32 %v1157_v3, %v1156_v2  ;;  %v1166_v6 = vmul.f32 %v1157_v3, %v1157_v3  ;;  %1159 = vst [vmem:[%s295_s29 + $0x8] sm:$0xff] %v1157_v3 }
 0x196   : > { %1161 = vadd.xlane.f32.xlu0 %v1160_v5  ;;  %v1167_v7 = vadd.f32 %v1166_v6, %v1165_v4 }
 0x198   : > { %1168 = vadd.xlane.f32.xlu1 %v1167_v7 }
 0x199   : > { %1448 = shalt.err (!%p1445_p7)
}
 0x19a   : > { %s1449_s19 = scalar_lea.hbm %s1685_s12, 256  ;;  %s1453_s28 = scalar_lea.hbm %s1733_s4, 768 }
 0x19b   : > { %p1450_p8 = scmp.ne.s32.totalorder %s1685_s12, %s1449_s19  ;;  %p1454_p11 = scmp.lt.u32.totalorder %s1685_s12, %s1733_s4 }
 0x19c   : > { %p1455_p12 = scmp.lt.u32.totalorder %s1453_s28, %s1449_s19  ;;  %p1457_p0 = scmp.lt.u32.totalorder %s1449_s19, %s1685_s12 }
 0x19d   : > { %p1451_p9 = pnand %p1450_p8, %p1582_p5 }
 0x19e   : > { %p1456_p13 = por %p1455_p12, %p1454_p11 }
 0x19f   : > { %p1452_p10 = pneg %p1451_p9 }
 0x1a0   : > { %p1458_p1 = por %p1457_p0, %p1456_p13 }
 0x1a2   : > { %p1459_p2 = pnand %p1458_p1, %p1452_p10 }
 0x1a4   : > { %1462 = shalt.err (!%p1459_p2)
}
 0x1a5   : > { %1387 = dma.vmem_to_hbm [thread:$0]  (%p1582_p5), %s1195_s13, 256, %s1685_s12, %s1172_s14   ;;  %vm1163_vm9 = vcmask 7168  }
 0x1a6   : > { %p336_p3 = scmp.lt.s32.totalorder %s1565_s25, 2 }
 0x1a8   : > { %s1747_s25 = smov (!%p336_p3, %s1565_s25), 2 }
 0x1a9   : > { %s1340_s10 = sshll.u32 %s1747_s25, 3 }
 0x1aa   : > { %s339_s16 = scalar_lea.vmem %s1734_s5, %s1340_s10  ;;  %s343_s19 = scalar_lea.vmem %s1735_s6, %s1340_s10 }
 0x223   : > { %v1162_v8 = vpop.xlane.xlu0 %1161 }
 0x224   : > { %1164 = vst.msk [vmem:[%s339_s16] sm:$0xff] %vm1163_vm9, %v1162_v8 }
 0x225   : > { %v1169_v9 = vpop.xlane.xlu1 %1168 }
 0x226   : > { %1170 = vst.msk [vmem:[%s343_s19] sm:$0xff] %vm1163_vm9, %v1169_v9 }
 0x227 PF: > { %p1393_p5 = scmp.ge.s32.totalorder %s1497_s24, 2  ;;  %s1212_s7 = sand.u32 1, %s1485_s21  }
 0x228   : > { %s1213_s25 = scalar_lea.sflag [#allocation4], %s1212_s7 }
 0x229   : > { %p1390_p4 = pnand %p1393_p5, %p1586_p6 }
 0x22b   : > { %1480 = dma.done.wait (!%p1390_p4), %s1213_s25, 256  }
 0x22c   : > { %1482 = vsyncadd (!%p1390_p4), %s1213_s25, 4294967040  ;;  %p17_p7 = scmp.ge.s32.totalorder %s1569_s27, 5   ;;  %s1738_s21 = smov %s1489_s22 }
 0x22d   : > { %s1739_s22 = smov %s1493_s23  ;;  %s1740_s23 = smov %s1580_s30 }
 0x22e   : > { %s1741_s24 = smov %s1569_s27  ;;  %19 = sbr.rel (!%p17_p7) target bundleno = 3 (0x3), region = 109 }
 0x235   :  { %1232 = vsyncpa [#allocation4], 1 }
 0x236   :  { %1234 = vsyncpa [#allocation4 + $0x1], 1 }

</bundles_post_ra>
